<compile_context>
chip_gen: v5e
topology: v5e:2x2
jax: 0.10.0
libtpu: 0.0.40
codegen_flags: <defaults>
</compile_context>

<pallas_src>
import jax
import jax.numpy as jnp
from jax import lax
from jax.experimental import pallas as pl
from jax.experimental.pallas import tpu as pltpu


# ----------------------------- Pallas kernel --------------------------------

def _msfn_fused_kernel(p_ref, w_cat_ref, b_cat_ref, w_pw_ref, b_pw_ref, o_ref):
    # p_ref:(TM,Kp)  w_cat:(Kp,Hp)  b_cat:(1,Hp)  w_pw:(Hp,Cp)  b_pw:(1,Cp)
    # o_ref:(TM,Cp)
    h = jnp.dot(p_ref[...], w_cat_ref[...], preferred_element_type=jnp.float32)
    h = jnp.maximum(h + b_cat_ref[...], 0.0)        # ReLU(x3) || ReLU(x5)
    o_ref[...] = (jnp.dot(h, w_pw_ref[...], preferred_element_type=jnp.float32)
                  + b_pw_ref[...])                  # 1x1 conv + bias


# ------------------------------- helpers -------------------------------------

def _round_up(x, m):
    return ((x + m - 1) // m) * m


def _pad2d(a, rows, cols):
    return jnp.pad(a, ((0, rows - a.shape[0]), (0, cols - a.shape[1])))


def _grouped_to_dense(w, c_in, taps):
    """(hidden, 1, k, k) grouped-conv weight -> dense (taps*c_in, hidden).

    K-index order is tap-major / input-channel-minor, matching the im2col
    built in the wrapper.  Output channel o only reads input channel
    o // (hidden // c_in) (PyTorch grouped-conv channel ordering).
    """
    hidden = w.shape[0]
    rep = hidden // c_in
    w_t = w.reshape(hidden, taps)                                   # [o, tap]
    onehot = (jnp.arange(hidden)[:, None] // rep
              == jnp.arange(c_in)[None, :]).astype(w.dtype)         # [o, c]
    dense = jnp.einsum("ot,oc->tco", w_t, onehot)                   # [tap,c,o]
    return dense.reshape(taps * c_in, hidden)


# ------------------------------- wrapper -------------------------------------

def msfn_forward(x, H, W, params):
    """Pallas implementation of MSFN.forward.  x: (B, N, C) with N == H*W."""
    B, N, C = x.shape
    assert H * W == N, f"H * W ({H} * {W}) must equal N ({N})"
    hidden = params["w3"].shape[0]
    M = B * H * W
    K = (9 + 25) * C                      # combined 3x3 + 5x5 im2col width

    # lane-dense padded sizes
    TILE_M = 128
    Mp = _round_up(M, TILE_M)
    Kp = _round_up(K, 128)
    Hp = _round_up(2 * hidden, 128)
    Cp = _round_up(C, 128)

    # -- glue: (B, N, C) is NHWC-flat already; pad spatially by 2 ------------
    x_nhwc = x.reshape(B, H, W, C)
    xp = jnp.pad(x_nhwc, ((0, 0), (2, 2), (2, 2), (0, 0)))

    # im2col: 3x3 taps live at offset +1 inside the pad-2 frame, 5x5 at +0.
    taps3 = [xp[:, 1 + di:1 + di + H, 1 + dj:1 + dj + W, :]
             for di in range(3) for dj in range(3)]
    taps5 = [xp[:, di:di + H, dj:dj + W, :]
             for di in range(5) for dj in range(5)]
    p3 = jnp.stack(taps3, axis=3).reshape(M, 9 * C)
    p5 = jnp.stack(taps5, axis=3).reshape(M, 25 * C)
    patches = _pad2d(jnp.concatenate([p3, p5], axis=1), Mp, Kp)

    # block-diagonal dense weight producing concat([x3, x5]) lanes
    w3d = _grouped_to_dense(params["w3"], C, 9)       # (9C,  hidden)
    w5d = _grouped_to_dense(params["w5"], C, 25)      # (25C, hidden)
    w_cat = jnp.zeros((K, 2 * hidden), jnp.float32)
    w_cat = w_cat.at[:9 * C, :hidden].set(w3d)
    w_cat = w_cat.at[9 * C:, hidden:].set(w5d)
    w_cat = _pad2d(w_cat, Kp, Hp)
    b_cat = _pad2d(jnp.concatenate([params["b3"], params["b5"]]).reshape(1, -1),
                   1, Hp)

    # 1x1 conv: (C, 2*hidden, 1, 1) -> (2*hidden, C), padded lane-dense
    w_pw = _pad2d(jnp.transpose(params["w_pw"][:, :, 0, 0], (1, 0)), Hp, Cp)
    b_pw = _pad2d(params["b_pw"].reshape(1, -1), 1, Cp)

    # -- single fused kernel --------------------------------------------------
    out = pl.pallas_call(
        _msfn_fused_kernel,
        out_shape=jax.ShapeDtypeStruct((Mp, Cp), jnp.float32),
        grid=(Mp // TILE_M,),
        in_specs=[
            pl.BlockSpec((TILE_M, Kp), lambda i: (i, 0)),
            pl.BlockSpec((Kp, Hp), lambda i: (0, 0)),
            pl.BlockSpec((1, Hp), lambda i: (0, 0)),
            pl.BlockSpec((Hp, Cp), lambda i: (0, 0)),
            pl.BlockSpec((1, Cp), lambda i: (0, 0)),
        ],
        out_specs=pl.BlockSpec((TILE_M, Cp), lambda i: (i, 0)),
        compiler_params=pltpu.CompilerParams(
            dimension_semantics=("parallel",)),
    )(patches, w_cat, b_cat, w_pw, b_pw)

    # slice off lane/row padding; rows are already (b, h*W + w) ordered.
    return out[:M, :C].reshape(B, N, C)


# ----------------------- pure-JAX reference (for check) ----------------------

def reference_forward(x, H, W, params):
    B, N, C = x.shape
    hidden = params["w3"].shape[0]
    dn = ("NCHW", "OIHW", "NCHW")
    x_nchw = jnp.transpose(x, (0, 2, 1)).reshape(B, C, H, W)
    x3 = lax.conv_general_dilated(x_nchw, params["w3"], (1, 1),
                                  [(1, 1), (1, 1)], dimension_numbers=dn,
                                  feature_group_count=C)
    x3 = jnp.maximum(x3 + params["b3"][None, :, None, None], 0.0)
    x5 = lax.conv_general_dilated(x_nchw, params["w5"], (1, 1),
                                  [(2, 2), (2, 2)], dimension_numbers=dn,
                                  feature_group_count=C)
    x5 = jnp.maximum(x5 + params["b5"][None, :, None, None], 0.0)
    xc = jnp.concatenate([x3, x5], axis=1)
    y = lax.conv_general_dilated(xc, params["w_pw"], (1, 1),
                                 [(0, 0), (0, 0)], dimension_numbers=dn)
    y = y + params["b_pw"][None, :, None, None]
    return jnp.transpose(y.reshape(B, C, N), (0, 2, 1))


# ------------------------------ params init ----------------------------------

def init_params(key, dim, hidden_dim):
    ks = jax.random.split(key, 3)

    def kaiming_fan_out(k, shape):        # gain sqrt(2), fan_out = O*kh*kw
        fan_out = shape[0] * shape[2] * shape[3]
        return jax.random.normal(k, shape, jnp.float32) * jnp.sqrt(2.0 / fan_out)

    def xavier(k, shape):                 # (O, I, 1, 1)
        fan_in, fan_out = shape[1], shape[0]
        return (jax.random.normal(k, shape, jnp.float32)
                * jnp.sqrt(2.0 / (fan_in + fan_out)))

    return {
        "w3": kaiming_fan_out(ks[0], (hidden_dim, 1, 3, 3)),
        "b3": jnp.zeros((hidden_dim,), jnp.float32),
        "w5": kaiming_fan_out(ks[1], (hidden_dim, 1, 5, 5)),
        "b5": jnp.zeros((hidden_dim,), jnp.float32),
        "w_pw": xavier(ks[2], (dim, 2 * hidden_dim, 1, 1)),
        "b_pw": jnp.zeros((dim,), jnp.float32),
    }


# --------------------------------- main ---------------------------------------

if __name__ == "__main__":
    key = jax.random.PRNGKey(0)
    kx, kp = jax.random.split(key)
    B, dim, hidden_dim = 2, 4, 32
    H = W = 8
    N = H * W

    x = jax.random.normal(kx, (B, N, dim), jnp.float32)
    params = init_params(kp, dim, hidden_dim)

    out = jax.block_until_ready(msfn_forward(x, H, W, params))
    assert out.shape == (B, N, dim), out.shape

    ref = jax.block_until_ready(reference_forward(x, H, W, params))
    max_err = float(jnp.max(jnp.abs(out - ref)))
    if max_err > 2e-3:
        raise AssertionError(f"mismatch vs reference: max abs err = {max_err}")

    print("KERNEL_OK")
</pallas_src>

<mosaic_0001>
module attributes {stable_mosaic.version = 11 : i64} {
  func.func @_msfn_fused_kernel(%arg0: i32, %arg1: memref<128x256xf32, #tpu.memory_space<vmem>>, %arg2: memref<256x128xf32, #tpu.memory_space<vmem>>, %arg3: memref<1x128xf32, #tpu.memory_space<vmem>>, %arg4: memref<128x128xf32, #tpu.memory_space<vmem>>, %arg5: memref<1x128xf32, #tpu.memory_space<vmem>>, %arg6: memref<128x128xf32, #tpu.memory_space<vmem>>) attributes {dimension_semantics = [#tpu.dimension_semantics<parallel>], iteration_bounds = array<i64: 1>, scalar_prefetch = 0 : i64, scratch_operands = 0 : i64, tpu.core_type = #tpu.core_type<tc>, window_params = [{transform_indices = @transform_0, window_bounds = array<i64: 128, 256>}, {pipeline_mode = #tpu.pipeline_mode<synchronous>, transform_indices = @transform_1, window_bounds = array<i64: 256, 128>}, {pipeline_mode = #tpu.pipeline_mode<synchronous>, transform_indices = @transform_2, window_bounds = array<i64: 1, 128>}, {pipeline_mode = #tpu.pipeline_mode<synchronous>, transform_indices = @transform_3, window_bounds = array<i64: 128, 128>}, {pipeline_mode = #tpu.pipeline_mode<synchronous>, transform_indices = @transform_4, window_bounds = array<i64: 1, 128>}, {transform_indices = @transform_5, window_bounds = array<i64: 128, 128>}]} {
    %c0 = arith.constant 0 : index
    %c0_0 = arith.constant 0 : index
    %0 = vector.load %arg1[%c0, %c0_0] : memref<128x256xf32, #tpu.memory_space<vmem>>, vector<128x256xf32>
    %c0_1 = arith.constant 0 : index
    %c0_2 = arith.constant 0 : index
    %1 = vector.load %arg2[%c0_1, %c0_2] : memref<256x128xf32, #tpu.memory_space<vmem>>, vector<256x128xf32>
    %cst = arith.constant dense<0.000000e+00> : vector<128x128xf32>
    %2 = tpu.matmul %0, %1, %cst {dimension_numbers = #tpu.dot_dimension_numbers<[1], [0], [0], [1], [0, 0, 1, 1], [], []>} : vector<128x256xf32>, vector<256x128xf32>, vector<128x128xf32> -> vector<128x128xf32>
    %c0_3 = arith.constant 0 : index
    %c0_4 = arith.constant 0 : index
    %3 = vector.load %arg3[%c0_3, %c0_4] : memref<1x128xf32, #tpu.memory_space<vmem>>, vector<1x128xf32>
    %4 = vector.broadcast %3 : vector<1x128xf32> to vector<128x128xf32>
    %5 = arith.addf %2, %4 : vector<128x128xf32>
    %cst_5 = arith.constant 0.000000e+00 : f32
    %6 = vector.broadcast %cst_5 : f32 to vector<128x128xf32>
    %7 = arith.maximumf %5, %6 : vector<128x128xf32>
    %c0_6 = arith.constant 0 : index
    %c0_7 = arith.constant 0 : index
    %8 = vector.load %arg4[%c0_6, %c0_7] : memref<128x128xf32, #tpu.memory_space<vmem>>, vector<128x128xf32>
    %cst_8 = arith.constant dense<0.000000e+00> : vector<128x128xf32>
    %9 = tpu.matmul %7, %8, %cst_8 {dimension_numbers = #tpu.dot_dimension_numbers<[1], [0], [0], [1], [0, 0, 1, 1], [], []>} : vector<128x128xf32>, vector<128x128xf32>, vector<128x128xf32> -> vector<128x128xf32>
    %c0_9 = arith.constant 0 : index
    %c0_10 = arith.constant 0 : index
    %10 = vector.load %arg5[%c0_9, %c0_10] : memref<1x128xf32, #tpu.memory_space<vmem>>, vector<1x128xf32>
    %11 = vector.broadcast %10 : vector<1x128xf32> to vector<128x128xf32>
    %12 = arith.addf %9, %11 : vector<128x128xf32>
    %c0_11 = arith.constant 0 : index
    %c0_12 = arith.constant 0 : index
    %13 = vector.load %arg6[%c0_11, %c0_12] : memref<128x128xf32, #tpu.memory_space<vmem>>, vector<128x128xf32>
    tpu.vector_store %arg6[%c0_11, %c0_12], %12 {strides = array<i32>} : memref<128x128xf32, #tpu.memory_space<vmem>>, vector<128x128xf32>,
    return
  }
  func.func @transform_0(%arg0: i32) -> (i32, i32) {
    %c0_i32 = arith.constant 0 : i32
    %c0_i32_0 = arith.constant 0 : i32
    return %arg0, %c0_i32 : i32, i32
  }
  func.func @transform_1(%arg0: i32) -> (i32, i32) {
    %c0_i32 = arith.constant 0 : i32
    %c0_i32_0 = arith.constant 0 : i32
    %c0_i32_1 = arith.constant 0 : i32
    return %c0_i32, %c0_i32_0 : i32, i32
  }
  func.func @transform_2(%arg0: i32) -> (i32, i32) {
    %c0_i32 = arith.constant 0 : i32
    %c0_i32_0 = arith.constant 0 : i32
    %c0_i32_1 = arith.constant 0 : i32
    return %c0_i32, %c0_i32_0 : i32, i32
  }
  func.func @transform_3(%arg0: i32) -> (i32, i32) {
    %c0_i32 = arith.constant 0 : i32
    %c0_i32_0 = arith.constant 0 : i32
    %c0_i32_1 = arith.constant 0 : i32
    return %c0_i32, %c0_i32_0 : i32, i32
  }
  func.func @transform_4(%arg0: i32) -> (i32, i32) {
    %c0_i32 = arith.constant 0 : i32
    %c0_i32_0 = arith.constant 0 : i32
    %c0_i32_1 = arith.constant 0 : i32
    return %c0_i32, %c0_i32_0 : i32, i32
  }
  func.func @transform_5(%arg0: i32) -> (i32, i32) {
    %c0_i32 = arith.constant 0 : i32
    %c0_i32_0 = arith.constant 0 : i32
    return %arg0, %c0_i32 : i32, i32
  }
}

</mosaic_0001>

<bundles_post_ra>
// kernel: tpu_custom_call.1
= control target key start
LH: loop header
LB: loop body
LE: loop exit
PB: predicated region body
PF: predicated region fallthrough
CT: control target
= control target key end

     0   :  { %10 = vsyncpa [#allocation3], 0  ;;  %s682_s0 = inlined_call_operand.hbm [shape: f32[128,256], index: 0, kind: input, shape index: {}]   ;;  %s683_s1 = inlined_call_operand.hbm [shape: f32[256,128], index: 1, kind: input, shape index: {}]   ;;  %s684_s2 = inlined_call_operand.vmem [shape: f32[1,128], index: 2, kind: input, shape index: {}]   ;;  %s685_s3 = inlined_call_operand.hbm [shape: f32[128,128], index: 3, kind: input, shape index: {}]   ;;  %s686_s4 = inlined_call_operand.vmem [shape: f32[1,128], index: 4, kind: input, shape index: {}]   ;;  %s687_s5 = inlined_call_operand.hbm [shape: f32[128,128], index: 5, kind: output, shape index: {}]  }
   0x1   :  { %11 = vsyncpa [#allocation6], 0  ;;  %s30_s20 = sshll.u32 %s683_s1, 4  ;;  %s31_s20 = int_to_ptr.hbm [resolvable:$true] %s30_s20 }
   0x2   :  { %12 = vsyncpa [#allocation4], 0  ;;  %s563_s21 = smov [#allocation5]   ;;  %s17_s25 = sshll.u32 %s682_s0, 4  ;;  %s18_s25 = int_to_ptr.hbm [resolvable:$true] %s17_s25 }
   0x3   :  { %s32_s22 = sshll.u32 %s563_s21, 4  ;;  %s564_s26 = smov 128   ;;  %s33_s22 = int_to_ptr.vmem [resolvable:$true] %s32_s22 }
   0x4   :  { %s565_s27 = smov 8   ;;  %s566_s28 = smov [#allocation2]  }
   0x5   :  { %38 = dma.hbm_to_vmem [thread:$0]  %s31_s20, 4096, %s33_s22, [#allocation6], %s564_s26, %s564_s26, %s565_s27  }
   0x6   :  { %s19_s29 = sshll.u32 %s566_s28, 4  ;;  %s567_s1 = smov 256   ;;  %s20_s29 = int_to_ptr.vmem [resolvable:$true] %s19_s29 }
   0x7   :  { %s568_s30 = smov 16   ;;  %s45_s8 = sshll.u32 %s685_s3, 4  ;;  %s46_s8 = int_to_ptr.hbm [resolvable:$true] %s45_s8 }
   0x8   :  { %25 = dma.hbm_to_vmem [thread:$0]  %s18_s25, 4096, %s20_s29, [#allocation3], %s567_s1, %s567_s1, %s568_s30  }
   0x9   :  { %s569_s9 = smov [#allocation7]  }
   0xa   :  { %s47_s0 = sshll.u32 %s569_s9, 4  ;;  %s48_s0 = int_to_ptr.vmem [resolvable:$true] %s47_s0 }
   0xb   :  { %53 = dma.hbm_to_vmem [thread:$0]  %s46_s8, 2048, %s48_s0, [#allocation6], %s564_s26, %s564_s26, %s565_s27  }
   0xc   :  { %557 = dma.done.wait [#allocation3], 4096  }
   0xd   :  { %558 = vsyncadd [#allocation3], 4294963200 }
   0xe   :  { %559 = dma.done.wait [#allocation6], 6144  }
   0xf   :  { %560 = vsyncadd [#allocation6], 4294961152  ;;  %v115_v0 = vld [vmem:[#allocation5 + $0x78] sm:$0xff]  ;;  %v114_v1 = vld [vmem:[#allocation5 + $0x70] sm:$0xff]  ;;  %s389_s15 = sshll.u32 %s687_s5, 4  ;;  %s390_s15 = int_to_ptr.hbm [resolvable:$true] %s389_s15 }
  0x10   :  { %v616_v2 = vld [vmem:[#allocation5 + $0xf8] sm:$0xff]  ;;  %136 = vmatpush.msra.mxu0 %v115_v0  ;;  %403 = vmatpush.msra.mxu3 %v115_v0  ;;  %v618_v3 = vld [vmem:[#allocation5 + $0xf0] sm:$0xff]  ;;  %v113_v4 = vld [vmem:[#allocation5 + $0x68] sm:$0xff] }
  0x11   :  { %201 = vmatpush.msra.mxu1 %v616_v2  ;;  %v621_v5 = vld [vmem:[#allocation5 + $0xe8] sm:$0xff]  ;;  %v112_v6 = vld [vmem:[#allocation5 + $0x60] sm:$0xff]  ;;  %v111_v8 = vld [vmem:[#allocation5 + $0x58] sm:$0xff] }
  0x12   :  { %137 = vmatpush.msra.mxu0 %v114_v1  ;;  %404 = vmatpush.msra.mxu3 %v114_v1  ;;  %v624_v7 = vld [vmem:[#allocation5 + $0xe0] sm:$0xff]  ;;  %v627_v9 = vld [vmem:[#allocation5 + $0xd8] sm:$0xff]  ;;  %v110_v10 = vld [vmem:[#allocation5 + $0x50] sm:$0xff] }
  0x13   :  { %202 = vmatpush.msra.mxu1 %v618_v3  ;;  %v630_v11 = vld [vmem:[#allocation5 + $0xd0] sm:$0xff]  ;;  %v109_v12 = vld [vmem:[#allocation5 + $0x48] sm:$0xff]  ;;  %v108_v14 = vld [vmem:[#allocation5 + $0x40] sm:$0xff] }
  0x14   :  { %138 = vmatpush.msra.mxu0 %v113_v4  ;;  %405 = vmatpush.msra.mxu3 %v113_v4  ;;  %v633_v13 = vld [vmem:[#allocation5 + $0xc8] sm:$0xff]  ;;  %v636_v15 = vld [vmem:[#allocation5 + $0xc0] sm:$0xff]  ;;  %v107_v16 = vld [vmem:[#allocation5 + $0x38] sm:$0xff] }
  0x15   :  { %203 = vmatpush.msra.mxu1 %v621_v5  ;;  %v639_v17 = vld [vmem:[#allocation5 + $0xb8] sm:$0xff]  ;;  %v106_v18 = vld [vmem:[#allocation5 + $0x30] sm:$0xff]  ;;  %v105_v20 = vld [vmem:[#allocation5 + $0x28] sm:$0xff] }
  0x16   :  { %139 = vmatpush.msra.mxu0 %v112_v6  ;;  %406 = vmatpush.msra.mxu3 %v112_v6  ;;  %v122_v19 = vld [vmem:[#allocation5 + $0xb0] sm:$0xff]  ;;  %v121_v21 = vld [vmem:[#allocation5 + $0xa8] sm:$0xff]  ;;  %v104_v22 = vld [vmem:[#allocation5 + $0x20] sm:$0xff] }
  0x17   :  { %204 = vmatpush.msra.mxu1 %v624_v7  ;;  %v120_v23 = vld [vmem:[#allocation5 + $0xa0] sm:$0xff]  ;;  %v103_v24 = vld [vmem:[#allocation5 + $0x18] sm:$0xff]  ;;  %v102_v26 = vld [vmem:[#allocation5 + $0x10] sm:$0xff] }
  0x18   :  { %140 = vmatpush.msra.mxu0 %v111_v8  ;;  %407 = vmatpush.msra.mxu3 %v111_v8  ;;  %v119_v25 = vld [vmem:[#allocation5 + $0x98] sm:$0xff]  ;;  %v118_v27 = vld [vmem:[#allocation5 + $0x90] sm:$0xff]  ;;  %v101_v28 = vld [vmem:[#allocation5 + $0x8] sm:$0xff] }
  0x19   :  { %205 = vmatpush.msra.mxu1 %v627_v9  ;;  %v117_v29 = vld [vmem:[#allocation5 + $0x88] sm:$0xff]  ;;  %v100_v30 = vld [vmem:[#allocation5] sm:$0xff]  ;;  %v70_v35 = vld [vmem:[#allocation2 + $0x10] sm:$0xff] }
  0x1a   :  { %141 = vmatpush.msra.mxu0 %v110_v10  ;;  %408 = vmatpush.msra.mxu3 %v110_v10  ;;  %v68_v31 = vld [vmem:[#allocation2] sm:$0xff]  ;;  %v69_v34 = vld [vmem:[#allocation2 + $0x8] sm:$0xff]  ;;  %v94_v36 = vld [vmem:[#allocation2 + $0xd0] sm:$0xff] }
  0x1b   :  { %206 = vmatpush.msra.mxu1 %v630_v11  ;;  %v92_v32 = vld [vmem:[#allocation2 + $0xc0] sm:$0xff]  ;;  %v71_v37 = vld [vmem:[#allocation2 + $0x18] sm:$0xff]  ;;  %v73_v40 = vld [vmem:[#allocation2 + $0x28] sm:$0xff] }
  0x1c   :  { %142 = vmatpush.msra.mxu0 %v109_v12  ;;  %409 = vmatpush.msra.mxu3 %v109_v12  ;;  %v116_v33 = vld [vmem:[#allocation5 + $0x80] sm:$0xff]  ;;  %v74_v41 = vld [vmem:[#allocation2 + $0x30] sm:$0xff]  ;;  %v75_v43 = vld [vmem:[#allocation2 + $0x38] sm:$0xff] }
  0x1d   :  { %207 = vmatpush.msra.mxu1 %v633_v13  ;;  %v72_v38 = vld [vmem:[#allocation2 + $0x20] sm:$0xff]  ;;  %v98_v42 = vld [vmem:[#allocation2 + $0xf0] sm:$0xff]  ;;  %v93_v45 = vld [vmem:[#allocation2 + $0xc8] sm:$0xff] }
  0x1e   :  { %143 = vmatpush.msra.mxu0 %v108_v14  ;;  %410 = vmatpush.msra.mxu3 %v108_v14  ;;  %v96_v39 = vld [vmem:[#allocation2 + $0xe0] sm:$0xff]  ;;  %v77_v46 = vld [vmem:[#allocation2 + $0x48] sm:$0xff]  ;;  %v78_v47 = vld [vmem:[#allocation2 + $0x50] sm:$0xff] }
  0x1f   :  { %208 = vmatpush.msra.mxu1 %v636_v15  ;;  %v76_v44 = vld [vmem:[#allocation2 + $0x40] sm:$0xff]  ;;  %v95_v48 = vld [vmem:[#allocation2 + $0xd8] sm:$0xff]  ;;  %v97_v51 = vld [vmem:[#allocation2 + $0xe8] sm:$0xff] }
  0x20   :  { %144 = vmatpush.msra.mxu0 %v107_v16  ;;  %411 = vmatpush.msra.mxu3 %v107_v16  ;;  %v79_v49 = vld [vmem:[#allocation2 + $0x58] sm:$0xff]  ;;  %v80_v50 = vld [vmem:[#allocation2 + $0x60] sm:$0xff]  ;;  %v81_v52 = vld [vmem:[#allocation2 + $0x68] sm:$0xff] }
  0x21   :  { %209 = vmatpush.msra.mxu1 %v639_v17  ;;  %v82_v53 = vld [vmem:[#allocation2 + $0x70] sm:$0xff]  ;;  %v99_v54 = vld [vmem:[#allocation2 + $0xf8] sm:$0xff]  ;;  %v295_v58 = vld [vmem:[#allocation7 + $0x68] sm:$0xff] }
  0x22   :  { %145 = vmatpush.msra.mxu0 %v106_v18  ;;  %412 = vmatpush.msra.mxu3 %v106_v18  ;;  %v83_v55 = vld [vmem:[#allocation2 + $0x78] sm:$0xff]  ;;  %v296_v57 = vld [vmem:[#allocation7 + $0x70] sm:$0xff]  ;;  %v84_v59 = vld [vmem:[#allocation2 + $0x80] sm:$0xff] }
  0x23   :  { %210 = vmatpush.msra.mxu1 %v122_v19  ;;  %v297_v56 = vld [vmem:[#allocation7 + $0x78] sm:$0xff]  ;;  %v294_v60 = vld [vmem:[#allocation7 + $0x60] sm:$0xff]  ;;  %v85_v61 = vld [vmem:[#allocation2 + $0x88] sm:$0xff] }
  0x24   :  { %146 = vmatpush.msra.mxu0 %v105_v20  ;;  %413 = vmatpush.msra.mxu3 %v105_v20  ;;  %v293_v62 = vld [vmem:[#allocation7 + $0x58] sm:$0xff]  ;;  %v292_v63 = vld [vmem:[#allocation7 + $0x50] sm:$0xff]  ;;  %v291_v0 = vld [vmem:[#allocation7 + $0x48] sm:$0xff] }
  0x25   :  { %211 = vmatpush.msra.mxu1 %v121_v21  ;;  %302 = vmatpush.msra.mxu2 %v297_v56  ;;  %v86_v1 = vld [vmem:[#allocation2 + $0x90] sm:$0xff]  ;;  %v289_v4 = vld [vmem:[#allocation7 + $0x38] sm:$0xff]  ;;  %v287_v6 = vld [vmem:[#allocation7 + $0x28] sm:$0xff] }
  0x26   :  { %147 = vmatpush.msra.mxu0 %v104_v22  ;;  %414 = vmatpush.msra.mxu3 %v104_v22  ;;  %v286_v8 = vld [vmem:[#allocation7 + $0x20] sm:$0xff]  ;;  %v90_v10 = vld [vmem:[#allocation2 + $0xb0] sm:$0xff]  ;;  %v285_v12 = vld [vmem:[#allocation7 + $0x18] sm:$0xff] }
  0x27   :  { %212 = vmatpush.msra.mxu1 %v120_v23  ;;  %303 = vmatpush.msra.mxu2 %v296_v57  ;;  %v283_v14 = vld [vmem:[#allocation7 + $0x8] sm:$0xff]  ;;  %v655_v16 = vld [vmem:[%s684_s2] ss:$0 sm:$0xff] }
  0x28   :  { %148 = vmatpush.msra.mxu0 %v103_v24  ;;  %415 = vmatpush.msra.mxu3 %v103_v24 }
  0x29   :  { %213 = vmatpush.msra.mxu1 %v119_v25  ;;  %304 = vmatpush.msra.mxu2 %v295_v58 }
  0x2a   :  { %149 = vmatpush.msra.mxu0 %v102_v26  ;;  %416 = vmatpush.msra.mxu3 %v102_v26 }
  0x2b   :  { %214 = vmatpush.msra.mxu1 %v118_v27  ;;  %305 = vmatpush.msra.mxu2 %v294_v60 }
  0x2c   :  { %150 = vmatpush.msra.mxu0 %v101_v28  ;;  %417 = vmatpush.msra.mxu3 %v101_v28 }
  0x2d   :  { %215 = vmatpush.msra.mxu1 %v117_v29  ;;  %306 = vmatpush.msra.mxu2 %v293_v62 }
  0x2e   :  { %151 = vmatpush.msra.mxu0 %v100_v30  ;;  %418 = vmatpush.msra.mxu3 %v100_v30 }
  0x2f   :  { %152 = vmatmul.f32.vlgmr.msra.gmra.mxu0 %v68_v31  ;;  %188 = vmatmul.f32.vlgmr.msra.gmra.mxu3 %v92_v32 }
  0x30   :  { %419 = vmatpush.msrb.mxu3 %v616_v2  ;;  %216 = vmatpush.msra.mxu1 %v116_v33  ;;  %v290_v2 = vld [vmem:[#allocation7 + $0x40] sm:$0xff] }
  0x31   :  { %217 = vmatmul.f32.vlgmr.msra.gmra.mxu1 %v69_v34  ;;  %307 = vmatpush.msra.mxu2 %v292_v63 }
  0x32   :  { %420 = vmatpush.msrb.mxu3 %v618_v3  ;;  %v87_v3 = vld [vmem:[#allocation2 + $0x98] sm:$0xff] }
  0x33   :  { %308 = vmatpush.msra.mxu2 %v291_v0 }
  0x34   :  { %421 = vmatpush.msrb.mxu3 %v621_v5  ;;  %v288_v5 = vld [vmem:[#allocation7 + $0x30] sm:$0xff] }
  0x35   :  { %309 = vmatpush.msra.mxu2 %v290_v2 }
  0x36   :  { %422 = vmatpush.msrb.mxu3 %v624_v7  ;;  %v88_v7 = vld [vmem:[#allocation2 + $0xa0] sm:$0xff] }
  0x37   :  { %155 = vmatmul.f32.gmra.mxu0 %v70_v35  ;;  %191 = vmatmul.f32.gmra.mxu3 %v94_v36 }
  0x38   :  { %423 = vmatpush.msrb.mxu3 %v627_v9  ;;  %310 = vmatpush.msra.mxu2 %v289_v4  ;;  %v89_v9 = vld [vmem:[#allocation2 + $0xa8] sm:$0xff] }
  0x39   :  { %220 = vmatmul.f32.gmra.mxu1 %v71_v37 }
  0x3a   :  { %424 = vmatpush.msrb.mxu3 %v630_v11  ;;  %311 = vmatpush.msra.mxu2 %v288_v5  ;;  %v91_v11 = vld [vmem:[#allocation2 + $0xb8] sm:$0xff] }
  0x3c   :  { %425 = vmatpush.msrb.mxu3 %v633_v13  ;;  %312 = vmatpush.msra.mxu2 %v287_v6  ;;  %v284_v13 = vld [vmem:[#allocation7 + $0x10] sm:$0xff] }
  0x3e   :  { %426 = vmatpush.msrb.mxu3 %v636_v15  ;;  %313 = vmatpush.msra.mxu2 %v286_v8  ;;  %v282_v15 = vld [vmem:[#allocation7] sm:$0xff] }
  0x3f   :  { %158 = vmatmul.f32.gmra.mxu0 %v72_v38  ;;  %194 = vmatmul.f32.gmra.mxu3 %v96_v39 }
  0x40   :  { %427 = vmatpush.msrb.mxu3 %v639_v17  ;;  %314 = vmatpush.msra.mxu2 %v285_v12 }
  0x41   :  { %223 = vmatmul.f32.gmra.mxu1 %v73_v40 }
  0x42   :  { %428 = vmatpush.msrb.mxu3 %v122_v19  ;;  %315 = vmatpush.msra.mxu2 %v284_v13 }
  0x44   :  { %429 = vmatpush.msrb.mxu3 %v121_v21  ;;  %316 = vmatpush.msra.mxu2 %v283_v14 }
  0x46   :  { %430 = vmatpush.msrb.mxu3 %v120_v23  ;;  %317 = vmatpush.msra.mxu2 %v282_v15 }
  0x47   :  { %161 = vmatmul.f32.gmra.mxu0 %v74_v41  ;;  %197 = vmatmul.f32.gmra.mxu3 %v98_v42 }
  0x48   :  { %431 = vmatpush.msrb.mxu3 %v119_v25 }
  0x49   :  { %226 = vmatmul.f32.gmra.mxu1 %v75_v43 }
  0x4a   :  { %432 = vmatpush.msrb.mxu3 %v118_v27 }
  0x4c   :  { %433 = vmatpush.msrb.mxu3 %v117_v29 }
  0x4e   :  { %434 = vmatpush.msrb.mxu3 %v116_v33 }
  0x4f   :  { %164 = vmatmul.f32.gmra.mxu0 %v76_v44  ;;  %253 = vmatmul.f32.vlgmr.msrb.gmra.mxu3 %v93_v45 }
  0x50   :  { %435 = vmatpush.msra.mxu3 %v297_v56 }
  0x51   :  { %229 = vmatmul.f32.gmra.mxu1 %v77_v46 }
  0x52   :  { %436 = vmatpush.msra.mxu3 %v296_v57 }
  0x54   :  { %437 = vmatpush.msra.mxu3 %v295_v58 }
  0x56   :  { %438 = vmatpush.msra.mxu3 %v294_v60 }
  0x57   :  { %167 = vmatmul.f32.gmra.mxu0 %v78_v47  ;;  %256 = vmatmul.f32.gmra.mxu3 %v95_v48 }
  0x58   :  { %439 = vmatpush.msra.mxu3 %v293_v62 }
  0x59   :  { %232 = vmatmul.f32.gmra.mxu1 %v79_v49 }
  0x5a   :  { %440 = vmatpush.msra.mxu3 %v292_v63 }
  0x5c   :  { %441 = vmatpush.msra.mxu3 %v291_v0 }
  0x5e   :  { %442 = vmatpush.msra.mxu3 %v290_v2 }
  0x5f   :  { %170 = vmatmul.f32.gmra.mxu0 %v80_v50  ;;  %259 = vmatmul.f32.gmra.mxu3 %v97_v51 }
  0x60   :  { %443 = vmatpush.msra.mxu3 %v289_v4 }
  0x61   :  { %235 = vmatmul.f32.gmra.mxu1 %v81_v52 }
  0x62   :  { %444 = vmatpush.msra.mxu3 %v288_v5 }
  0x64   :  { %445 = vmatpush.msra.mxu3 %v287_v6 }
  0x66   :  { %446 = vmatpush.msra.mxu3 %v286_v8 }
  0x67   :  { %173 = vmatmul.f32.gmra.mxu0 %v82_v53  ;;  %262 = vmatmul.f32.gmra.mxu3 %v99_v54 }
  0x68   :  { %447 = vmatpush.msra.mxu3 %v285_v12 }
  0x69   :  { %238 = vmatmul.f32.gmra.mxu1 %v83_v55 }
  0x6a   :  { %448 = vmatpush.msra.mxu3 %v284_v13 }
  0x6c   :  { %449 = vmatpush.msra.mxu3 %v283_v14 }
  0x6e   :  { %450 = vmatpush.msra.mxu3 %v282_v15 }
  0x6f   :  { %176 = vmatmul.f32.gmra.mxu0 %v84_v59 }
  0x71   :  { %241 = vmatmul.f32.gmra.mxu1 %v85_v61 }
  0x77   :  { %179 = vmatmul.f32.gmra.mxu0 %v86_v1 }
  0x79   :  { %244 = vmatmul.f32.gmra.mxu1 %v87_v3 }
  0x7f   :  { %182 = vmatmul.f32.gmra.mxu0 %v88_v7 }
  0x81   :  { %247 = vmatmul.f32.gmra.mxu1 %v89_v9 }
  0x87   :  { %185 = vmatmul.f32.gmra.mxu0 %v90_v10 }
  0x89   :  { %250 = vmatmul.f32.gmra.mxu1 %v91_v11 }
  0xac   :  { %v153_v17 = vpop.f32.mrf.mxu0 }
  0xad   :  { %v154_v18 = vadd.f32 %v655_v16, %v153_v17 }
  0xae   :  { %v218_v19 = vpop.f32.mrf.mxu1 }
  0xaf   :  { %v219_v20 = vadd.f32 %v218_v19, %v154_v18 }
  0xb1   :  { %v266_v21 = vmax.f32 %v219_v20, 0.0 }
  0xb2   :  { %v189_v22 = vpop.f32.mrf.mxu3 }
  0xb3   :  { %318 = vmatmul.f32.vlgmr.msra.gmra.mxu2 %v266_v21  ;;  %v190_v45 = vadd.f32 %v655_v16, %v189_v22 }
  0xb4   :  { %v156_v23 = vpop.f32.mrf.mxu0 }
  0xb5   :  { %v157_v24 = vadd.f32 %v655_v16, %v156_v23 }
  0xb6   :  { %v221_v25 = vpop.f32.mrf.mxu1 }
  0xb7   :  { %v222_v26 = vadd.f32 %v221_v25, %v157_v24 }
  0xb9   :  { %v267_v27 = vmax.f32 %v222_v26, 0.0 }
  0xba   :  { %v192_v28 = vpop.f32.mrf.mxu3 }
  0xbb   :  { %321 = vmatmul.f32.gmra.mxu2 %v267_v27  ;;  %v193_v54 = vadd.f32 %v655_v16, %v192_v28 }
  0xbc   :  { %v159_v29 = vpop.f32.mrf.mxu0 }
  0xbd   :  { %v160_v30 = vadd.f32 %v655_v16, %v159_v29 }
  0xbe   :  { %v224_v31 = vpop.f32.mrf.mxu1 }
  0xbf   :  { %v225_v32 = vadd.f32 %v224_v31, %v160_v30 }
  0xc1   :  { %v268_v33 = vmax.f32 %v225_v32, 0.0 }
  0xc2   :  { %v195_v34 = vpop.f32.mrf.mxu3 }
  0xc3   :  { %324 = vmatmul.f32.gmra.mxu2 %v268_v33  ;;  %v196_v63 = vadd.f32 %v655_v16, %v195_v34  ;;  %v460_v34 = vld [vmem:[%s686_s4] ss:$0 sm:$0xff]  ;;  %s570_s4 = smov [#allocation8]  }
  0xc4   :  { %v162_v35 = vpop.f32.mrf.mxu0  ;;  %s387_s12 = sshll.u32 %s570_s4, 4  ;;  %s388_s12 = int_to_ptr.vmem [resolvable:$true] %s387_s12 }
  0xc5   :  { %v163_v36 = vadd.f32 %v655_v16, %v162_v35 }
  0xc6   :  { %v227_v37 = vpop.f32.mrf.mxu1 }
  0xc7   :  { %v228_v38 = vadd.f32 %v227_v37, %v163_v36 }
  0xc9   :  { %v269_v39 = vmax.f32 %v228_v38, 0.0 }
  0xca   :  { %v198_v40 = vpop.f32.mrf.mxu3 }
  0xcb   :  { %327 = vmatmul.f32.gmra.mxu2 %v269_v39  ;;  %v199_v8 = vadd.f32 %v655_v16, %v198_v40 }
  0xcc   :  { %v165_v41 = vpop.f32.mrf.mxu0 }
  0xcd   :  { %v166_v42 = vadd.f32 %v655_v16, %v165_v41 }
  0xce   :  { %v230_v43 = vpop.f32.mrf.mxu1 }
  0xcf   :  { %v231_v44 = vadd.f32 %v230_v43, %v166_v42 }
  0xd1   :  { %v270_v46 = vmax.f32 %v231_v44, 0.0 }
  0xd2   :  { %v254_v47 = vpop.f32.mrf.mxu3 }
  0xd3   :  { %v255_v48 = vadd.f32 %v254_v47, %v190_v45  ;;  %330 = vmatmul.f32.gmra.mxu2 %v270_v46 }
  0xd4   :  { %v168_v49 = vpop.f32.mrf.mxu0 }
  0xd5   :  { %v278_v50 = vmax.f32 %v255_v48, 0.0  ;;  %v169_v51 = vadd.f32 %v655_v16, %v168_v49 }
  0xd6   :  { %v233_v52 = vpop.f32.mrf.mxu1 }
  0xd7   :  { %v234_v53 = vadd.f32 %v233_v52, %v169_v51  ;;  %354 = vmatmul.f32.vlgmr.msra.gmra.mxu3 %v278_v50 }
  0xd9   :  { %v271_v55 = vmax.f32 %v234_v53, 0.0 }
  0xda   :  { %v257_v56 = vpop.f32.mrf.mxu3 }
  0xdb   :  { %v258_v57 = vadd.f32 %v257_v56, %v193_v54  ;;  %333 = vmatmul.f32.gmra.mxu2 %v271_v55 }
  0xdc   :  { %v171_v58 = vpop.f32.mrf.mxu0 }
  0xdd   :  { %v279_v59 = vmax.f32 %v258_v57, 0.0  ;;  %v172_v60 = vadd.f32 %v655_v16, %v171_v58 }
  0xde   :  { %v236_v61 = vpop.f32.mrf.mxu1 }
  0xdf   :  { %v237_v62 = vadd.f32 %v236_v61, %v172_v60  ;;  %357 = vmatmul.f32.gmra.mxu3 %v279_v59 }
  0xe1   :  { %v272_v0 = vmax.f32 %v237_v62, 0.0 }
  0xe2   :  { %v260_v1 = vpop.f32.mrf.mxu3 }
  0xe3   :  { %v261_v2 = vadd.f32 %v260_v1, %v196_v63  ;;  %336 = vmatmul.f32.gmra.mxu2 %v272_v0 }
  0xe4   :  { %v174_v3 = vpop.f32.mrf.mxu0 }
  0xe5   :  { %v280_v4 = vmax.f32 %v261_v2, 0.0  ;;  %v175_v5 = vadd.f32 %v655_v16, %v174_v3 }
  0xe6   :  { %v239_v6 = vpop.f32.mrf.mxu1 }
  0xe7   :  { %v240_v7 = vadd.f32 %v239_v6, %v175_v5  ;;  %360 = vmatmul.f32.gmra.mxu3 %v280_v4 }
  0xe9   :  { %v273_v9 = vmax.f32 %v240_v7, 0.0 }
  0xea   :  { %v263_v10 = vpop.f32.mrf.mxu3 }
  0xeb   :  { %v264_v11 = vadd.f32 %v263_v10, %v199_v8  ;;  %339 = vmatmul.f32.gmra.mxu2 %v273_v9 }
  0xec   :  { %v177_v12 = vpop.f32.mrf.mxu0 }
  0xed   :  { %v281_v13 = vmax.f32 %v264_v11, 0.0  ;;  %v178_v14 = vadd.f32 %v655_v16, %v177_v12 }
  0xee   :  { %v242_v15 = vpop.f32.mrf.mxu1 }
  0xef   :  { %v243_v17 = vadd.f32 %v242_v15, %v178_v14  ;;  %363 = vmatmul.f32.gmra.mxu3 %v281_v13 }
  0xf1   :  { %v274_v18 = vmax.f32 %v243_v17, 0.0 }
  0xf3   :  { %342 = vmatmul.f32.gmra.mxu2 %v274_v18 }
  0xf4   :  { %v180_v19 = vpop.f32.mrf.mxu0 }
  0xf5   :  { %v181_v20 = vadd.f32 %v655_v16, %v180_v19 }
  0xf6   :  { %v245_v21 = vpop.f32.mrf.mxu1 }
  0xf7   :  { %v246_v22 = vadd.f32 %v245_v21, %v181_v20 }
  0xf9   :  { %v275_v23 = vmax.f32 %v246_v22, 0.0 }
  0xfb   :  { %345 = vmatmul.f32.gmra.mxu2 %v275_v23 }
  0xfc   :  { %v183_v24 = vpop.f32.mrf.mxu0 }
  0xfd   :  { %v184_v25 = vadd.f32 %v655_v16, %v183_v24 }
  0xfe   :  { %v248_v26 = vpop.f32.mrf.mxu1 }
  0xff   :  { %v249_v27 = vadd.f32 %v248_v26, %v184_v25 }
 0x101   :  { %v276_v28 = vmax.f32 %v249_v27, 0.0 }
 0x103   :  { %348 = vmatmul.f32.gmra.mxu2 %v276_v28 }
 0x104   :  { %v186_v29 = vpop.f32.mrf.mxu0 }
 0x105   :  { %v187_v30 = vadd.f32 %v655_v16, %v186_v29 }
 0x106   :  { %v251_v31 = vpop.f32.mrf.mxu1 }
 0x107   :  { %v252_v32 = vadd.f32 %v251_v31, %v187_v30 }
 0x109   :  { %v277_v33 = vmax.f32 %v252_v32, 0.0 }
 0x10b   :  { %351 = vmatmul.f32.gmra.mxu2 %v277_v33 }
 0x136   :  { %v319_v35 = vpop.f32.mrf.mxu2 }
 0x137   :  { %v320_v36 = vadd.f32 %v460_v34, %v319_v35 }
 0x139   :  { %367 = vst [vmem:[#allocation8] sm:$0xff] %v320_v36 }
 0x13e   :  { %v322_v37 = vpop.f32.mrf.mxu2 }
 0x13f   :  { %v323_v38 = vadd.f32 %v460_v34, %v322_v37 }
 0x141   :  { %368 = vst [vmem:[#allocation8 + $0x8] sm:$0xff] %v323_v38 }
 0x146   :  { %v325_v39 = vpop.f32.mrf.mxu2 }
 0x147   :  { %v326_v40 = vadd.f32 %v460_v34, %v325_v39 }
 0x149   :  { %369 = vst [vmem:[#allocation8 + $0x10] sm:$0xff] %v326_v40 }
 0x14e   :  { %v328_v41 = vpop.f32.mrf.mxu2 }
 0x14f   :  { %v329_v42 = vadd.f32 %v460_v34, %v328_v41 }
 0x151   :  { %370 = vst [vmem:[#allocation8 + $0x18] sm:$0xff] %v329_v42 }
 0x156   :  { %v331_v16 = vpop.f32.mrf.mxu2 }
 0x157   :  { %v332_v43 = vadd.f32 %v460_v34, %v331_v16 }
 0x159   :  { %371 = vst [vmem:[#allocation8 + $0x20] sm:$0xff] %v332_v43 }
 0x15a   :  { %v355_v44 = vpop.f32.mrf.mxu3 }
 0x15b   :  { %v356_v45 = vadd.f32 %v460_v34, %v355_v44 }
 0x15d   :  { %379 = vst [vmem:[#allocation8 + $0x60] sm:$0xff] %v356_v45 }
 0x15e   :  { %v334_v46 = vpop.f32.mrf.mxu2 }
 0x15f   :  { %v335_v47 = vadd.f32 %v460_v34, %v334_v46 }
 0x161   :  { %372 = vst [vmem:[#allocation8 + $0x28] sm:$0xff] %v335_v47 }
 0x162   :  { %v358_v48 = vpop.f32.mrf.mxu3 }
 0x163   :  { %v359_v49 = vadd.f32 %v460_v34, %v358_v48 }
 0x165   :  { %380 = vst [vmem:[#allocation8 + $0x68] sm:$0xff] %v359_v49 }
 0x166   :  { %v337_v50 = vpop.f32.mrf.mxu2 }
 0x167   :  { %v338_v51 = vadd.f32 %v460_v34, %v337_v50 }
 0x169   :  { %373 = vst [vmem:[#allocation8 + $0x30] sm:$0xff] %v338_v51 }
 0x16a   :  { %v361_v52 = vpop.f32.mrf.mxu3 }
 0x16b   :  { %v362_v53 = vadd.f32 %v460_v34, %v361_v52 }
 0x16d   :  { %381 = vst [vmem:[#allocation8 + $0x70] sm:$0xff] %v362_v53 }
 0x16e   :  { %v340_v54 = vpop.f32.mrf.mxu2 }
 0x16f   :  { %v341_v55 = vadd.f32 %v460_v34, %v340_v54 }
 0x171   :  { %374 = vst [vmem:[#allocation8 + $0x38] sm:$0xff] %v341_v55 }
 0x172   :  { %v364_v56 = vpop.f32.mrf.mxu3 }
 0x173   :  { %v365_v57 = vadd.f32 %v460_v34, %v364_v56 }
 0x175   :  { %382 = vst [vmem:[#allocation8 + $0x78] sm:$0xff] %v365_v57 }
 0x176   :  { %v343_v58 = vpop.f32.mrf.mxu2 }
 0x177   :  { %v344_v59 = vadd.f32 %v460_v34, %v343_v58 }
 0x179   :  { %375 = vst [vmem:[#allocation8 + $0x40] sm:$0xff] %v344_v59 }
 0x17e   :  { %v346_v60 = vpop.f32.mrf.mxu2 }
 0x17f   :  { %v347_v61 = vadd.f32 %v460_v34, %v346_v60 }
 0x181   :  { %376 = vst [vmem:[#allocation8 + $0x48] sm:$0xff] %v347_v61 }
 0x186   :  { %v349_v62 = vpop.f32.mrf.mxu2 }
 0x187   :  { %v350_v63 = vadd.f32 %v460_v34, %v349_v62 }
 0x189   :  { %377 = vst [vmem:[#allocation8 + $0x50] sm:$0xff] %v350_v63 }
 0x18e   :  { %v352_v0 = vpop.f32.mrf.mxu2 }
 0x18f   :  { %v353_v1 = vadd.f32 %v460_v34, %v352_v0 }
 0x191   :  { %378 = vst [vmem:[#allocation8 + $0x58] sm:$0xff] %v353_v1 }
 0x192   :  { %395 = dma.vmem_to_hbm [thread:$0]  %s388_s12, 2048, %s390_s15, [#allocation4], %s564_s26, %s564_s26, %s565_s27  }
 0x193   :  { %561 = dma.done.wait [#allocation4], 2048  }
 0x194   :  { %562 = vsyncadd [#allocation4], 4294965248 }
 0x195   :  { %400 = vsyncpa [#allocation3], 1 }
 0x196   :  { %401 = vsyncpa [#allocation6], 1 }
 0x197   :  { %402 = vsyncpa [#allocation4], 1 }

</bundles_post_ra>
